<compile_context>
chip_gen: v6e
topology: v6e:2x2x1
jax: 0.10.0
libtpu: 0.0.40
codegen_flags: <defaults>
</compile_context>

<pallas_src>
import functools

import jax
import jax.numpy as jnp
from jax.experimental import pallas as pl
from jax.experimental.pallas import tpu as pltpu


def _round_up(x, m):
    return ((x + m - 1) // m) * m


def _cdiv(a, b):
    return (a + b - 1) // b


# ----------------------------------------------------------------------------
# Pallas kernel: fused GAP + folded (backbone-proj @ Linear1) + 2 MXU layers
#   pooled[c] = mean_hw x[:, c, :, :]                (XLU lane reduction)
#   h1 = ReLU(sum_c pooled[c] * W_fold[c, :] + b1)   (VPU broadcast-FMAs)
#   h2 = ReLU(h1 @ W2 + b2)                          (MXU)
#   out = (h2 @ W3 + b3)[:, :num_classes]            (MXU, narrow store)
# ----------------------------------------------------------------------------
def _make_fused_kernel(C, HW, NF_PAD, H_PAD, NC_PAD, num_classes):
    inv_hw = 1.0 / float(HW)

    def kernel(x_ref, wf_ref, w2_ref, w3_ref, b_ref, o_ref):
        # x_ref : (TM, C*HW) f32 flattened NCHW feature map tile.
        # wf_ref: (8, NF_PAD) f32 folded weight, rows [0, C) used.
        # w2_ref: (NF_PAD, H_PAD) bf16.   w3_ref: (H_PAD, NC_PAD) bf16.
        # b_ref : (8, lane) f32; row 0 = b1, row 1 = b2, row 2 = b3.
        # o_ref : (TM, num_classes) f32.
        x = x_ref[...]
        tm = x.shape[0]

        # Layer 1: fused global-average-pool + folded projection.
        # Accumulator initialized with b1; C is tiny so a static unroll of
        # VPU broadcast-FMAs beats a 128-deep zero-padded MXU contraction.
        h1 = jnp.broadcast_to(b_ref[0:1, :NF_PAD], (tm, NF_PAD))
        for c in range(C):  # static unroll, C == 4
            pooled_c = jnp.sum(x[:, c * HW:(c + 1) * HW], axis=1,
                               keepdims=True) * inv_hw            # (TM, 1)
            h1 = h1 + pooled_c * wf_ref[c:c + 1, :NF_PAD]         # (TM, NF)
        h1 = jnp.maximum(h1, 0.0)

        # Layer 2: bf16 MXU dot, f32 accumulate; f32 bias + ReLU (v5e-safe).
        h2 = jnp.dot(h1.astype(jnp.bfloat16), w2_ref[...],
                     preferred_element_type=jnp.float32)
        h2 = jnp.maximum(h2 + b_ref[1:2, :H_PAD], 0.0)

        # Layer 3: bf16 MXU dot; narrow (num_classes-wide) masked store.
        h3 = jnp.dot(h2.astype(jnp.bfloat16), w3_ref[...],
                     preferred_element_type=jnp.float32)
        h3 = h3 + b_ref[2:3, :NC_PAD]
        o_ref[...] = h3[:, :num_classes].astype(o_ref.dtype)

    return kernel


def fused_head_pallas(x, padded_params, num_classes):
    """Fused pooling + folded projection + classifier head as one Pallas call.

    x: [B, C, H, W] f32 image batch (input to the stand-in backbone).
    Returns: [B, num_classes] f32 logits.
    """
    wf = padded_params["wf"]       # (8, NF_PAD) f32
    w2 = padded_params["w2"]       # (NF_PAD, H_PAD) bf16
    w3 = padded_params["w3"]       # (H_PAD, NC_PAD) bf16
    bias = padded_params["bias"]   # (8, lane) f32, rows = b1|b2|b3

    B, C, H, W = x.shape
    HW = H * W
    CHW = C * HW
    NF_PAD = wf.shape[1]
    H_PAD = w2.shape[1]
    NC_PAD = w3.shape[1]

    # Batch tile: single step for small B; otherwise >= 2 "parallel" steps
    # (keeps both v7x TensorCores busy), capped at 512 rows per step.
    if B <= 64:
        tm = _round_up(B, 8)
    else:
        tm = min(512, _round_up(_cdiv(B, 2), 8))
    b_pad = _round_up(B, tm)
    grid = (b_pad // tm,)

    x_flat = x.reshape(B, CHW).astype(jnp.float32)
    if b_pad != B:
        # Padded rows produce nonzero (bias-driven) junk; sliced off below.
        x_flat = jnp.pad(x_flat, ((0, b_pad - B), (0, 0)))

    kernel = _make_fused_kernel(C, HW, NF_PAD, H_PAD, NC_PAD, num_classes)

    flops = (b_pad * CHW                                   # pooling adds
             + 2 * b_pad * (C * NF_PAD                      # folded layer 1
                            + NF_PAD * H_PAD + H_PAD * NC_PAD))
    bytes_accessed = (x_flat.size * 4 + wf.size * 4 + bias.size * 4
                      + (w2.size + w3.size) * 2 + b_pad * num_classes * 4)

    out = pl.pallas_call(
        kernel,
        out_shape=jax.ShapeDtypeStruct((b_pad, num_classes), jnp.float32),
        grid=grid,
        in_specs=[
            # Activations: tiled over batch, default double-buffered pipeline.
            pl.BlockSpec((tm, CHW), lambda i: (i, 0)),
            # Weights / biases: constant index maps, single-buffered residents.
            pl.BlockSpec(wf.shape, lambda i: (0, 0),
                         pipeline_mode=pl.Buffered(1)),
            pl.BlockSpec(w2.shape, lambda i: (0, 0),
                         pipeline_mode=pl.Buffered(1)),
            pl.BlockSpec(w3.shape, lambda i: (0, 0),
                         pipeline_mode=pl.Buffered(1)),
            pl.BlockSpec(bias.shape, lambda i: (0, 0),
                         pipeline_mode=pl.Buffered(1)),
        ],
        out_specs=pl.BlockSpec((tm, num_classes), lambda i: (i, 0)),
        compiler_params=pltpu.CompilerParams(
            dimension_semantics=("parallel",)),
        cost_estimate=pl.CostEstimate(flops=flops, transcendentals=0,
                                      bytes_accessed=bytes_accessed),
    )(x_flat, wf, w2, w3, bias)

    return out[:B]


# ----------------------------------------------------------------------------
# Parameter construction (logical shapes, f32) — matches the module's head:
#   nn.Linear(in_feat, num_feat) -> ReLU -> nn.Linear(num_feat, hidden_size)
#   -> ReLU -> nn.Linear(hidden_size, num_classes)
# ----------------------------------------------------------------------------
def init_classifier_params(key, in_feat, num_feat, hidden_size, num_classes):
    k1, k2, k3, k4, k5, k6 = jax.random.split(key, 6)
    s1 = 1.0 / jnp.sqrt(in_feat)
    s2 = 1.0 / jnp.sqrt(num_feat)
    s3 = 1.0 / jnp.sqrt(hidden_size)
    return {
        "w1": jax.random.uniform(k1, (in_feat, num_feat), jnp.float32, -s1, s1),
        "b1": jax.random.uniform(k2, (1, num_feat), jnp.float32, -s1, s1),
        "w2": jax.random.uniform(k3, (num_feat, hidden_size), jnp.float32,
                                 -s2, s2),
        "b2": jax.random.uniform(k4, (1, hidden_size), jnp.float32, -s2, s2),
        "w3": jax.random.uniform(k5, (hidden_size, num_classes), jnp.float32,
                                 -s3, s3),
        "b3": jax.random.uniform(k6, (1, num_classes), jnp.float32, -s3, s3),
    }


def init_backbone_params(key, channels, num_feat, hidden_size):
    """Deterministic linear stand-in for the Mammo_AGE backbone (built ONCE).

    W_bb = concat([Wg, Wl1..Wl4], axis=1) so that
      pooled @ W_bb == torch.cat([global_emb] + local_emb, dim=1)
    with global_emb = pooled @ Wg and local_emb[i] = pooled @ Wl_i.
    """
    kg, k1, k2, k3, k4 = jax.random.split(key, 5)
    wg = jax.random.normal(kg, (channels, num_feat), jnp.float32) * 0.1
    wls = [jax.random.normal(k, (channels, num_feat + hidden_size),
                             jnp.float32) * 0.1 for k in (k1, k2, k3, k4)]
    return jnp.concatenate([wg] + wls, axis=1)  # [C, in_feat]


def pad_params_for_tpu(wbb, clf_params, num_feat, hidden_size, num_classes):
    """Fold W_bb into W1, zero-pad feature dims, stack biases (one-time)."""
    channels = wbb.shape[0]
    C_SUB = _round_up(channels, 8)
    NF_PAD = _round_up(num_feat, 128)      # 32 -> 128
    H_PAD = _round_up(hidden_size, 128)    # 16 -> 128
    NC_PAD = _round_up(num_classes, 128)   # 2  -> 128 (dot width only)
    LANE = max(NF_PAD, H_PAD, NC_PAD)

    # Fold: (pooled @ W_bb) @ W1 == pooled @ (W_bb @ W1); no bias/activation
    # between the stand-in projection and Linear1.  Fold in full f32.
    wfold = jnp.dot(wbb, clf_params["w1"],
                    precision=jax.lax.Precision.HIGHEST)   # [C, num_feat]

    def pad2(a, rows, cols, dtype):
        out = jnp.zeros((rows, cols), dtype)
        return out.at[:a.shape[0], :a.shape[1]].set(a.astype(dtype))

    bias = jnp.zeros((8, LANE), jnp.float32)
    bias = bias.at[0, :num_feat].set(clf_params["b1"][0])
    bias = bias.at[1, :hidden_size].set(clf_params["b2"][0])
    bias = bias.at[2, :num_classes].set(clf_params["b3"][0])

    return {
        "wf": pad2(wfold, C_SUB, NF_PAD, jnp.float32),     # VPU path: f32
        "w2": pad2(clf_params["w2"], NF_PAD, H_PAD, jnp.bfloat16),
        "w3": pad2(clf_params["w3"], H_PAD, NC_PAD, jnp.bfloat16),
        "bias": bias,
    }


# ----------------------------------------------------------------------------
# FineTuneMammoAGE.forward equivalent (jitted end-to-end)
# ----------------------------------------------------------------------------
@functools.partial(jax.jit, static_argnames=("num_classes", "max_t", "use_sto"))
def finetune_mammo_age_forward(x, padded_params, num_classes=2, max_t=50,
                               use_sto=False):
    del max_t, use_sto  # consumed only by the (stand-in) backbone
    predict = fused_head_pallas(x, padded_params, num_classes)
    return {"predict": predict}


if __name__ == "__main__":
    # Small, module-consistent shapes.
    B, C, H, W = 2, 4, 16, 16
    num_feat = 32       # backbone_model.num_feat
    hidden_size = 16    # _cfg['hidden_size']
    num_classes = 2
    in_feat = num_feat * 5 + hidden_size * 4  # 224

    root = jax.random.PRNGKey(0)
    k_x, k_bb, k_head = jax.random.split(root, 3)

    x = jax.random.normal(k_x, (B, C, H, W), jnp.float32)

    # Stand-in backbone + classifier params built ONCE, outside the forward.
    wbb = init_backbone_params(k_bb, C, num_feat, hidden_size)
    clf = init_classifier_params(k_head, in_feat, num_feat, hidden_size,
                                 num_classes)
    padded_params = pad_params_for_tpu(wbb, clf, num_feat, hidden_size,
                                       num_classes)

    out = finetune_mammo_age_forward(x, padded_params,
                                     num_classes=num_classes)
    predict = jax.block_until_ready(out["predict"])

    assert predict.shape == (B, num_classes)
    assert predict.dtype == jnp.float32

    # -------------------------------------------------------------------
    # Reference: module-style forward (per-branch embeddings -> concat ->
    # 3-layer MLP).  Backbone projection + Linear1 in f32 (HIGHEST), the two
    # MXU layers with the same bf16-input / f32-accumulate chain as the kernel.
    # -------------------------------------------------------------------
    hp = jax.lax.Precision.HIGHEST
    pooled = jnp.mean(x, axis=(2, 3))
    global_emb = jnp.dot(pooled, wbb[:, :num_feat], precision=hp)
    local_emb = []
    off, step = num_feat, num_feat + hidden_size
    for _ in range(4):
        local_emb.append(jnp.dot(pooled, wbb[:, off:off + step], precision=hp))
        off += step
    combined = jnp.concatenate([global_emb] + local_emb, axis=1)
    h1 = jnp.maximum(jnp.dot(combined, clf["w1"], precision=hp) + clf["b1"],
                     0.0)
    h2 = jnp.maximum(
        jnp.dot(h1.astype(jnp.bfloat16), clf["w2"].astype(jnp.bfloat16),
                preferred_element_type=jnp.float32) + clf["b2"], 0.0)
    ref = jnp.dot(h2.astype(jnp.bfloat16), clf["w3"].astype(jnp.bfloat16),
                  preferred_element_type=jnp.float32) + clf["b3"]

    assert jnp.all(jnp.isfinite(predict))
    assert jnp.allclose(predict, ref, atol=2e-3, rtol=2e-2)

    print("KERNEL_OK")
</pallas_src>

<mosaic_0001>
module attributes {stable_mosaic.version = 11 : i64} {
  func.func @kernel(%arg0: i32, %arg1: memref<8x1024xf32, #tpu.memory_space<vmem>>, %arg2: memref<8x128xf32, #tpu.memory_space<vmem>>, %arg3: memref<128x128xbf16, #tpu.memory_space<vmem>>, %arg4: memref<128x128xbf16, #tpu.memory_space<vmem>>, %arg5: memref<8x128xf32, #tpu.memory_space<vmem>>, %arg6: memref<8x2xf32, #tpu.memory_space<vmem>>) attributes {dimension_semantics = [#tpu.dimension_semantics<parallel>], iteration_bounds = array<i64: 1>, scalar_prefetch = 0 : i64, scratch_operands = 0 : i64, tpu.core_type = #tpu.core_type<tc>, window_params = [{transform_indices = @transform_0, window_bounds = array<i64: 8, 1024>}, {pipeline_mode = #tpu.pipeline_mode<synchronous>, transform_indices = @transform_1, window_bounds = array<i64: 8, 128>}, {pipeline_mode = #tpu.pipeline_mode<synchronous>, transform_indices = @transform_2, window_bounds = array<i64: 128, 128>}, {pipeline_mode = #tpu.pipeline_mode<synchronous>, transform_indices = @transform_3, window_bounds = array<i64: 128, 128>}, {pipeline_mode = #tpu.pipeline_mode<synchronous>, transform_indices = @transform_4, window_bounds = array<i64: 8, 128>}, {transform_indices = @transform_5, window_bounds = array<i64: 8, 2>}]} {
    %c0 = arith.constant 0 : index
    %c0_0 = arith.constant 0 : index
    %0 = vector.load %arg1[%c0, %c0_0] : memref<8x1024xf32, #tpu.memory_space<vmem>>, vector<8x1024xf32>
    %c0_1 = arith.constant 0 : index
    %c0_2 = arith.constant 0 : index
    %1 = vector.load %arg5[%c0_1, %c0_2] : memref<8x128xf32, #tpu.memory_space<vmem>>, vector<1x128xf32>
    %2 = vector.shape_cast %1 : vector<1x128xf32> to vector<1x128xf32>
    %3 = vector.broadcast %2 : vector<1x128xf32> to vector<8x128xf32>
    %4 = vector.extract_strided_slice %0 {offsets = [0, 0], sizes = [8, 256], strides = [1, 1]} : vector<8x1024xf32> to vector<8x256xf32>
    %cst = arith.constant dense<0.000000e+00> : vector<8xf32>
    %5 = vector.multi_reduction <add>, %4, %cst [1] : vector<8x256xf32> to vector<8xf32>
    %6 = vector.shape_cast %5 : vector<8xf32> to vector<8x1xf32>
    %cst_3 = arith.constant 3.906250e-03 : f32
    %7 = vector.broadcast %cst_3 : f32 to vector<8x1xf32>
    %8 = arith.mulf %6, %7 : vector<8x1xf32>
    %c0_4 = arith.constant 0 : index
    %c0_5 = arith.constant 0 : index
    %9 = vector.load %arg2[%c0_4, %c0_5] : memref<8x128xf32, #tpu.memory_space<vmem>>, vector<1x128xf32>
    %10 = vector.broadcast %8 : vector<8x1xf32> to vector<8x128xf32>
    %11 = vector.broadcast %9 : vector<1x128xf32> to vector<8x128xf32>
    %12 = arith.mulf %10, %11 : vector<8x128xf32>
    %13 = arith.addf %3, %12 : vector<8x128xf32>
    %14 = vector.extract_strided_slice %0 {offsets = [0, 256], sizes = [8, 256], strides = [1, 1]} : vector<8x1024xf32> to vector<8x256xf32>
    %cst_6 = arith.constant dense<0.000000e+00> : vector<8xf32>
    %15 = vector.multi_reduction <add>, %14, %cst_6 [1] : vector<8x256xf32> to vector<8xf32>
    %16 = vector.shape_cast %15 : vector<8xf32> to vector<8x1xf32>
    %cst_7 = arith.constant 3.906250e-03 : f32
    %17 = vector.broadcast %cst_7 : f32 to vector<8x1xf32>
    %18 = arith.mulf %16, %17 : vector<8x1xf32>
    %c1 = arith.constant 1 : index
    %c0_8 = arith.constant 0 : index
    %19 = vector.load %arg2[%c1, %c0_8] : memref<8x128xf32, #tpu.memory_space<vmem>>, vector<1x128xf32>
    %20 = vector.broadcast %18 : vector<8x1xf32> to vector<8x128xf32>
    %21 = vector.broadcast %19 : vector<1x128xf32> to vector<8x128xf32>
    %22 = arith.mulf %20, %21 : vector<8x128xf32>
    %23 = arith.addf %13, %22 : vector<8x128xf32>
    %24 = vector.extract_strided_slice %0 {offsets = [0, 512], sizes = [8, 256], strides = [1, 1]} : vector<8x1024xf32> to vector<8x256xf32>
    %cst_9 = arith.constant dense<0.000000e+00> : vector<8xf32>
    %25 = vector.multi_reduction <add>, %24, %cst_9 [1] : vector<8x256xf32> to vector<8xf32>
    %26 = vector.shape_cast %25 : vector<8xf32> to vector<8x1xf32>
    %cst_10 = arith.constant 3.906250e-03 : f32
    %27 = vector.broadcast %cst_10 : f32 to vector<8x1xf32>
    %28 = arith.mulf %26, %27 : vector<8x1xf32>
    %c2 = arith.constant 2 : index
    %c0_11 = arith.constant 0 : index
    %29 = vector.load %arg2[%c2, %c0_11] : memref<8x128xf32, #tpu.memory_space<vmem>>, vector<1x128xf32>
    %30 = vector.broadcast %28 : vector<8x1xf32> to vector<8x128xf32>
    %31 = vector.broadcast %29 : vector<1x128xf32> to vector<8x128xf32>
    %32 = arith.mulf %30, %31 : vector<8x128xf32>
    %33 = arith.addf %23, %32 : vector<8x128xf32>
    %34 = vector.extract_strided_slice %0 {offsets = [0, 768], sizes = [8, 256], strides = [1, 1]} : vector<8x1024xf32> to vector<8x256xf32>
    %cst_12 = arith.constant dense<0.000000e+00> : vector<8xf32>
    %35 = vector.multi_reduction <add>, %34, %cst_12 [1] : vector<8x256xf32> to vector<8xf32>
    %36 = vector.shape_cast %35 : vector<8xf32> to vector<8x1xf32>
    %cst_13 = arith.constant 3.906250e-03 : f32
    %37 = vector.broadcast %cst_13 : f32 to vector<8x1xf32>
    %38 = arith.mulf %36, %37 : vector<8x1xf32>
    %c3 = arith.constant 3 : index
    %c0_14 = arith.constant 0 : index
    %39 = vector.load %arg2[%c3, %c0_14] : memref<8x128xf32, #tpu.memory_space<vmem>>, vector<1x128xf32>
    %40 = vector.broadcast %38 : vector<8x1xf32> to vector<8x128xf32>
    %41 = vector.broadcast %39 : vector<1x128xf32> to vector<8x128xf32>
    %42 = arith.mulf %40, %41 : vector<8x128xf32>
    %43 = arith.addf %33, %42 : vector<8x128xf32>
    %cst_15 = arith.constant 0.000000e+00 : f32
    %44 = vector.broadcast %cst_15 : f32 to vector<8x128xf32>
    %45 = arith.maximumf %43, %44 : vector<8x128xf32>
    %46 = arith.truncf %45 : vector<8x128xf32> to vector<8x128xbf16>
    %c0_16 = arith.constant 0 : index
    %c0_17 = arith.constant 0 : index
    %47 = vector.load %arg3[%c0_16, %c0_17] : memref<128x128xbf16, #tpu.memory_space<vmem>>, vector<128x128xbf16>
    %cst_18 = arith.constant dense<0.000000e+00> : vector<8x128xf32>
    %48 = tpu.matmul %46, %47, %cst_18 {dimension_numbers = #tpu.dot_dimension_numbers<[1], [0], [0], [1], [0, 0, 1, 1], [], []>} : vector<8x128xbf16>, vector<128x128xbf16>, vector<8x128xf32> -> vector<8x128xf32>
    %c1_19 = arith.constant 1 : index
    %c0_20 = arith.constant 0 : index
    %49 = vector.load %arg5[%c1_19, %c0_20] : memref<8x128xf32, #tpu.memory_space<vmem>>, vector<1x128xf32>
    %50 = vector.broadcast %49 : vector<1x128xf32> to vector<8x128xf32>
    %51 = arith.addf %48, %50 : vector<8x128xf32>
    %cst_21 = arith.constant 0.000000e+00 : f32
    %52 = vector.broadcast %cst_21 : f32 to vector<8x128xf32>
    %53 = arith.maximumf %51, %52 : vector<8x128xf32>
    %54 = arith.truncf %53 : vector<8x128xf32> to vector<8x128xbf16>
    %c0_22 = arith.constant 0 : index
    %c0_23 = arith.constant 0 : index
    %55 = vector.load %arg4[%c0_22, %c0_23] : memref<128x128xbf16, #tpu.memory_space<vmem>>, vector<128x128xbf16>
    %cst_24 = arith.constant dense<0.000000e+00> : vector<8x128xf32>
    %56 = tpu.matmul %54, %55, %cst_24 {dimension_numbers = #tpu.dot_dimension_numbers<[1], [0], [0], [1], [0, 0, 1, 1], [], []>} : vector<8x128xbf16>, vector<128x128xbf16>, vector<8x128xf32> -> vector<8x128xf32>
    %c2_25 = arith.constant 2 : index
    %c0_26 = arith.constant 0 : index
    %57 = vector.load %arg5[%c2_25, %c0_26] : memref<8x128xf32, #tpu.memory_space<vmem>>, vector<1x128xf32>
    %58 = vector.broadcast %57 : vector<1x128xf32> to vector<8x128xf32>
    %59 = arith.addf %56, %58 : vector<8x128xf32>
    %60 = vector.extract_strided_slice %59 {offsets = [0, 0], sizes = [8, 2], strides = [1, 1]} : vector<8x128xf32> to vector<8x2xf32>
    %c0_27 = arith.constant 0 : index
    %c0_28 = arith.constant 0 : index
    %61 = vector.load %arg6[%c0_27, %c0_28] : memref<8x2xf32, #tpu.memory_space<vmem>>, vector<8x2xf32>
    tpu.vector_store %arg6[%c0_27, %c0_28], %60 {strides = array<i32>} : memref<8x2xf32, #tpu.memory_space<vmem>>, vector<8x2xf32>,
    return
  }
  func.func @transform_0(%arg0: i32) -> (i32, i32) {
    %c0_i32 = arith.constant 0 : i32
    %c0_i32_0 = arith.constant 0 : i32
    return %arg0, %c0_i32 : i32, i32
  }
  func.func @transform_1(%arg0: i32) -> (i32, i32) {
    %c0_i32 = arith.constant 0 : i32
    %c0_i32_0 = arith.constant 0 : i32
    %c0_i32_1 = arith.constant 0 : i32
    return %c0_i32, %c0_i32_0 : i32, i32
  }
  func.func @transform_2(%arg0: i32) -> (i32, i32) {
    %c0_i32 = arith.constant 0 : i32
    %c0_i32_0 = arith.constant 0 : i32
    %c0_i32_1 = arith.constant 0 : i32
    return %c0_i32, %c0_i32_0 : i32, i32
  }
  func.func @transform_3(%arg0: i32) -> (i32, i32) {
    %c0_i32 = arith.constant 0 : i32
    %c0_i32_0 = arith.constant 0 : i32
    %c0_i32_1 = arith.constant 0 : i32
    return %c0_i32, %c0_i32_0 : i32, i32
  }
  func.func @transform_4(%arg0: i32) -> (i32, i32) {
    %c0_i32 = arith.constant 0 : i32
    %c0_i32_0 = arith.constant 0 : i32
    %c0_i32_1 = arith.constant 0 : i32
    return %c0_i32, %c0_i32_0 : i32, i32
  }
  func.func @transform_5(%arg0: i32) -> (i32, i32) {
    %c0_i32 = arith.constant 0 : i32
    %c0_i32_0 = arith.constant 0 : i32
    return %arg0, %c0_i32 : i32, i32
  }
}

</mosaic_0001>

<bundles_post_ra>
// kernel: finetune_mammo_age_forward.1
= control target key start
LH: loop header
LB: loop body
LE: loop exit
PB: predicated region body
PF: predicated region fallthrough
CT: control target
= control target key end

     0   :  { %v405_v3 = vmov 0.0   ;;  %vm406_vm0 = vmmov 0   ;;  %vm300_vm1 = vcmask 15360   ;;  %s551_s0 = inlined_call_operand.vmem [shape: f32[8,1024], index: 0, kind: input, shape index: {}]   ;;  %s552_s2 = inlined_call_operand.vmem [shape: bf16[128,128], index: 2, kind: input, shape index: {}]   ;;  %s553_s3 = inlined_call_operand.vmem [shape: bf16[128,128], index: 3, kind: input, shape index: {}]   ;;  %s554_s1 = inlined_call_operand.vmem [shape: f32[8,128], index: 1, kind: input, shape index: {}]   ;;  %s555_s4 = inlined_call_operand.vmem [shape: f32[8,128], index: 4, kind: input, shape index: {}]   ;;  %s556_s5 = inlined_call_operand.vmem [shape: f32[8,2], index: 5, kind: output, shape index: {}]  }
   0x1   :  { %v21_v0 = vld [vmem:[%s551_s0] sm:$0xff]  ;;  %v22_v1 = vld [vmem:[%s551_s0 + $0x8] sm:$0xff]  ;;  %347 = vmatprep.subr.bf16.mxu0 %v405_v3  ;;  %367 = vmatprep.subr.bf16.mxu1 %v405_v3  ;;  %v23_v6 = vld [vmem:[%s551_s0 + $0x10] sm:$0xff] }
   0x2   :  { %v25_v2 = vld [vmem:[%s551_s0 + $0x20] sm:$0xff]  ;;  %v34_v4 = vadd.f32 %v22_v1, %v21_v0  ;;  %v26_v5 = vld [vmem:[%s551_s0 + $0x28] sm:$0xff]  ;;  %v24_v7 = vld [vmem:[%s551_s0 + $0x18] sm:$0xff]  ;;  %363 = vmatprep.mubr.msk.bf16.mxu0 %vm406_vm0, %v405_v3  ;;  %383 = vmatprep.mubr.msk.bf16.mxu1 %vm406_vm0, %v405_v3 }
   0x3   :  { %v56_v8 = vadd.f32 %v26_v5, %v25_v2  ;;  %v27_v9 = vld [vmem:[%s551_s0 + $0x30] sm:$0xff]  ;;  %v28_v10 = vld [vmem:[%s551_s0 + $0x38] sm:$0xff]  ;;  %v45_v11 = vadd.f32 %v24_v7, %v23_v6  ;;  %v391_v15 = vld [vmem:[%s552_s2 + $0x28] sm:$0xff]  }
   0x4   :  { %35 = vadd.xlane.f32.xlu0 %v34_v4  ;;  %v389_v12 = vld [vmem:[%s552_s2 + $0x38] sm:$0xff]   ;;  %v67_v13 = vadd.f32 %v28_v10, %v27_v9  ;;  %v390_v14 = vld [vmem:[%s552_s2 + $0x30] sm:$0xff]   ;;  %v392_v16 = vld [vmem:[%s552_s2 + $0x20] sm:$0xff]  }
   0x5   :  { %57 = vadd.xlane.f32.xlu1 %v56_v8  ;;  %348 = vmatpush3.bf16.msra.mxu0 %v389_v12  ;;  %v393_v17 = vld [vmem:[%s552_s2 + $0x18] sm:$0xff]   ;;  %v394_v18 = vld [vmem:[%s552_s2 + $0x10] sm:$0xff]   ;;  %v395_v19 = vld [vmem:[%s552_s2 + $0x8] sm:$0xff]  }
   0x6   :  { %349 = vmatprep.subr.bf16.mxu0 %v405_v3  ;;  %v396_v20 = vld [vmem:[%s552_s2] sm:$0xff]   ;;  %v397_v21 = vld [vmem:[%s553_s3 + $0x38] sm:$0xff]   ;;  %v398_v22 = vld [vmem:[%s553_s3 + $0x30] sm:$0xff]  }
   0x7   :  { %368 = vmatpush3.bf16.msra.mxu1 %v397_v21  ;;  %v399_v23 = vld [vmem:[%s553_s3 + $0x28] sm:$0xff]   ;;  %v400_v24 = vld [vmem:[%s553_s3 + $0x20] sm:$0xff]   ;;  %v401_v25 = vld [vmem:[%s553_s3 + $0x18] sm:$0xff]  }
   0x8   :  { %46 = vadd.xlane.f32.xlu0 %v45_v11  ;;  %369 = vmatprep.subr.bf16.mxu1 %v405_v3  ;;  %v402_v26 = vld [vmem:[%s553_s3 + $0x10] sm:$0xff]   ;;  %v307_v27 = vld [vmem:[%s554_s1] ss:$0 sm:$0xff]  ;;  %v308_v33 = vld [vmem:[%s554_s1 + $0x1] ss:$0 sm:$0xff] }
   0x9   :  { %68 = vadd.xlane.f32.xlu1 %v67_v13  ;;  %350 = vmatpush3.bf16.msra.mxu0 %v390_v14  ;;  %v306_v32 = vld [vmem:[%s555_s4] ss:$0 sm:$0xff]  ;;  %v309_v38 = vld [vmem:[%s554_s1 + $0x2] ss:$0 sm:$0xff]  ;;  %v310_v39 = vld [vmem:[%s554_s1 + $0x3] ss:$0 sm:$0xff] }
   0xa   :  { %351 = vmatprep.subr.bf16.mxu0 %v405_v3  ;;  %v403_v50 = vld [vmem:[%s553_s3 + $0x8] sm:$0xff]   ;;  %v404_v51 = vld [vmem:[%s553_s3] sm:$0xff]  }
   0xb   :  { %370 = vmatpush3.bf16.msra.mxu1 %v398_v22  ;;  %v311_v52 = vld [vmem:[%s555_s4 + $0x1] ss:$0 sm:$0xff]  ;;  %v320_v60 = vld [vmem:[%s555_s4 + $0x2] ss:$0 sm:$0xff] }
   0xc   :  { %371 = vmatprep.subr.bf16.mxu1 %v405_v3 }
   0xd   :  { %352 = vmatpush3.bf16.msra.mxu0 %v391_v15 }
   0xe   :  { %353 = vmatprep.subr.bf16.mxu0 %v405_v3 }
   0xf   :  { %372 = vmatpush3.bf16.msra.mxu1 %v399_v23 }
  0x10   :  { %373 = vmatprep.subr.bf16.mxu1 %v405_v3 }
  0x11   :  { %354 = vmatpush3.bf16.msra.mxu0 %v392_v16 }
  0x12   :  { %355 = vmatprep.subr.bf16.mxu0 %v405_v3 }
  0x13   :  { %374 = vmatpush3.bf16.msra.mxu1 %v400_v24 }
  0x14   :  { %375 = vmatprep.subr.bf16.mxu1 %v405_v3 }
  0x15   :  { %356 = vmatpush3.bf16.msra.mxu0 %v393_v17 }
  0x16   :  { %357 = vmatprep.subr.bf16.mxu0 %v405_v3 }
  0x17   :  { %376 = vmatpush3.bf16.msra.mxu1 %v401_v25 }
  0x18   :  { %377 = vmatprep.subr.bf16.mxu1 %v405_v3 }
  0x19   :  { %358 = vmatpush3.bf16.msra.mxu0 %v394_v18 }
  0x1a   :  { %359 = vmatprep.subr.bf16.mxu0 %v405_v3 }
  0x1b   :  { %378 = vmatpush3.bf16.msra.mxu1 %v402_v26 }
  0x1c   :  { %379 = vmatprep.subr.bf16.mxu1 %v405_v3 }
  0x1d   :  { %360 = vmatpush3.bf16.msra.mxu0 %v395_v19 }
  0x1e   :  { %361 = vmatprep.subr.bf16.mxu0 %v405_v3 }
  0x1f   :  { %380 = vmatpush3.bf16.msra.mxu1 %v403_v50 }
  0x20   :  { %381 = vmatprep.subr.bf16.mxu1 %v405_v3 }
  0x21   :  { %362 = vmatpush3.bf16.msra.mxu0 %v396_v20 }
  0x23   :  { %382 = vmatpush3.bf16.msra.mxu1 %v404_v51 }
  0x8d   :  { %v36_v28 = vpop.xlane.xlu0 %35 }
  0x8e   :  { %v37_v29 = vmul.f32 0.00390625, %v36_v28  ;;  %v58_v30 = vpop.xlane.xlu1 %57 }
  0x8f   :  { %v59_v35 = vmul.f32 0.00390625, %v58_v30 }
  0x90   :  { %v43_v31 = vmul.f32 %v307_v27, %v37_v29 }
  0x91   :  { %v47_v34 = vpop.xlane.xlu0 %46  ;;  %v65_v43 = vmul.f32 %v309_v38, %v59_v35 }
  0x92   :  { %v48_v36 = vmul.f32 0.00390625, %v47_v34  ;;  %v69_v37 = vpop.xlane.xlu1 %68  ;;  %v44_v41 = vadd.f32 %v306_v32, %v43_v31 }
  0x93   :  { %v70_v40 = vmul.f32 0.00390625, %v69_v37 }
  0x94   :  { %v54_v42 = vmul.f32 %v308_v33, %v48_v36 }
  0x95   :  { %v76_v45 = vmul.f32 %v310_v39, %v70_v40 }
  0x96   :  { %v55_v44 = vadd.f32 %v54_v42, %v44_v41 }
  0x98   :  { %v66_v46 = vadd.f32 %v65_v43, %v55_v44 }
  0x9a   :  { %v77_v47 = vadd.f32 %v76_v45, %v66_v46 }
  0x9c   :  { %v78_v48 = vmax.f32 %v77_v47, 0.0 }
  0x9e   :  { %v79_v49 = vpack.c.bf16 %v78_v48, %v78_v48 }
  0xa0   :  { %364 = vmatmul.mubr.bf16.vlgmr.msra.gmra.mxu0 %v79_v49 }
 0x160   :  { %v183_v53 = vpop.f32.mrf.mxu0 }
 0x161   :  { %v184_v54 = vadd.f32 %v311_v52, %v183_v53 }
 0x162   :  { %v365_v55 = vpop.f32.mrf.mxu0 }
 0x163   :  { %v189_v56 = vmax.f32 %v184_v54, 0.0 }
 0x164   :  { %v186_v57 = vpop.f32.mrf.mxu0 }
 0x165   :  { %v190_v58 = vpack.c.bf16 %v189_v56, %v189_v56 }
 0x166   :  { %v366_v59 = vpop.f32.mrf.mxu0 }
 0x167   :  { %384 = vmatmul.mubr.bf16.vlgmr.msra.gmra.mxu1 %v190_v58 }
 0x227   :  { %v294_v61 = vpop.f32.mrf.mxu1 }
 0x228   :  { %v295_v62 = vadd.f32 %v320_v60, %v294_v61 }
 0x229   :  { %v385_v63 = vpop.f32.mrf.mxu1 }
 0x22a   :  { %301 = vst.msk [vmem:[%s556_s5] sm:$0xff] %vm300_vm1, %v295_v62 }
 0x22b   :  { %v297_v0 = vpop.f32.mrf.mxu1 }
 0x22d   :  { %v386_v1 = vpop.f32.mrf.mxu1 }

</bundles_post_ra>
